<compile_context>
chip_gen: v5e
topology: v5e:2x2
jax: 0.10.0
libtpu: 0.0.40
codegen_flags: <defaults>
</compile_context>

<pallas_src>
import functools

import jax
import jax.numpy as jnp
from jax.experimental import pallas as pl
from jax.experimental.pallas import tpu as pltpu


def _round_up(x, m):
    return (x + m - 1) // m * m


def _mxu_kernel(x_ref, w_ref, b_ref, o_ref):
    # x_ref: (TM, K)   packed inputs       (K = pack * input_dim, tiny)
    # w_ref: (K, L)    block-diagonal scaled weights (L = pack * embedding_dim)
    # b_ref: (1, L)    tiled bias
    # o_ref: (TM, L)   lane-dense packed outputs
    h = jnp.dot(x_ref[...], w_ref[...],
                precision=jax.lax.Precision.HIGHEST,     # exact f32 contraction
                preferred_element_type=jnp.float32)
    h = h + b_ref[...]
    o_ref[...] = jnp.maximum(h, 0.0).astype(o_ref.dtype)


def _vpu_kernel(x_ref, w_ref, b_ref, o_ref, *, k_dim):
    # Fallback: K-deep contraction as unrolled VPU broadcast FMAs (exact f32).
    x = x_ref[...]
    w = w_ref[...]
    h = b_ref[...] + x[:, 0:1] * w[0:1, :]
    for k in range(1, k_dim):
        h = h + x[:, k:k + 1] * w[k:k + 1, :]
    o_ref[...] = jnp.maximum(h, 0.0).astype(o_ref.dtype)


def prepare_input_embedding_params(weight, bias, *, scale, input_dim,
                                    embedding_dim, use_tags=True):
    """One-time parameter prep (hoisted out of the per-call path).

    weight: (linear_dim, input_dim) torch nn.Linear layout; bias: (linear_dim,).
    Returns (w_tiled, b_tiled, pack):
      pack    : rows packed per lane-dense output row (128 // embedding_dim or 1)
      w_tiled : (pack*input_dim, pack*embedding_dim), scale folded in
      b_tiled : (1, pack*embedding_dim)
    """
    linear_dim = embedding_dim - 3 if use_tags else embedding_dim
    assert weight.shape == (linear_dim, input_dim)
    assert bias.shape == (linear_dim,)
    pad = embedding_dim - linear_dim

    # (D_in, E) layout, zero-padded tag columns, scale folded into the weight.
    w = jnp.pad(jnp.transpose(weight).astype(jnp.float32), ((0, 0), (0, pad)))
    w = w * jnp.float32(scale)
    b = jnp.pad(bias.astype(jnp.float32), ((0, pad),))

    if embedding_dim < 128 and 128 % embedding_dim == 0:
        pack = 128 // embedding_dim
    else:
        # NOTE: pack == 1 with embedding_dim < 128 falls back to masked
        # (vst.msk) partial stores -- correct but not lane-dense.
        pack = 1
    w_tiled = jnp.kron(jnp.eye(pack, dtype=jnp.float32), w)         # (pack*D, pack*E)
    b_tiled = jnp.tile(b, pack).reshape(1, pack * embedding_dim)    # (1, pack*E)
    return w_tiled, b_tiled, pack


def _build_call(kernel, n_pack_pad, tile, k_dim, lanes, out_dtype, vmem_limit):
    grid = -(-n_pack_pad // tile)   # cdiv; last block may be partial (masked)
    return pl.pallas_call(
        kernel,
        out_shape=jax.ShapeDtypeStruct((n_pack_pad, lanes), out_dtype),
        grid=(grid,),
        in_specs=[
            pl.BlockSpec((tile, k_dim), lambda i: (i, 0)),     # row-tiled activations
            pl.BlockSpec((k_dim, lanes), lambda i: (0, 0)),    # grid-invariant weight
            pl.BlockSpec((1, lanes), lambda i: (0, 0)),        # grid-invariant bias
        ],
        out_specs=pl.BlockSpec((tile, lanes), lambda i: (i, 0)),
        compiler_params=pltpu.CompilerParams(
            dimension_semantics=("parallel",),
            vmem_limit_bytes=vmem_limit),
    )


def input_embedding_forward(vel, w_tiled, b_tiled, pack, *, embedding_dim,
                            block_rows=8192, out_dtype=jnp.float32):
    """vel: (N, input_dim) f32.  Returns (N, embedding_dim) in out_dtype."""
    n, input_dim = vel.shape
    k_dim = pack * input_dim
    lanes = pack * embedding_dim
    itemsize = jnp.dtype(out_dtype).itemsize
    sub = 8 * max(1, 4 // itemsize)          # output sublane granularity (8 f32 / 16 bf16)

    # Pad packed rows only to the sublane granularity (NOT a full tile); the
    # grid handles the remainder with a partial tail block.
    n_pack = -(-n // pack)
    n_pack_pad = _round_up(max(n_pack, sub), sub)
    n_pad = n_pack_pad * pack
    if n_pad != n:
        vel = jnp.pad(vel, ((0, n_pad - n), (0, 0)))
    x_packed = vel.reshape(n_pack_pad, k_dim)      # row-major view, no data motion

    # Row tile: as large as allowed, but guarantee >=2 grid steps when possible
    # so v7x's two TensorCores both get work.
    block_rows = _round_up(max(block_rows, sub), sub)
    tile = min(block_rows, n_pack_pad)
    if tile == n_pack_pad and n_pack_pad >= 2 * sub:
        tile = _round_up(-(-n_pack_pad // 2), sub)

    # Double-buffered VMEM footprint: the (tile, k_dim) f32 activation block is
    # lane-padded to 128 lanes in VMEM; the output block is (tile, lanes).
    vmem_bytes = (2 * tile * 128 * 4
                  + 2 * tile * max(lanes, 128) * itemsize
                  + (2 << 20))                                   # weights/bias/headroom
    vmem_limit = int(min(max(vmem_bytes, 16 << 20), 64 << 20))

    try:
        call = _build_call(_mxu_kernel, n_pack_pad, tile, k_dim, lanes,
                           out_dtype, vmem_limit)
        out_packed = call(x_packed, w_tiled, b_tiled)
    except Exception:
        # Fallback for Mosaic builds without fp32 contract precision on the MXU:
        # exact unrolled VPU chain (previously validated path).
        call = _build_call(functools.partial(_vpu_kernel, k_dim=k_dim),
                           n_pack_pad, tile, k_dim, lanes, out_dtype, vmem_limit)
        out_packed = call(x_packed, w_tiled, b_tiled)

    out = out_packed.reshape(n_pad, embedding_dim)
    if n_pad != n:
        out = out[:n]          # at most sub*pack - 1 padded rows; cheap slice
    return out


def _reference(vel, weight, bias, *, scale, use_tags=True):
    h = jnp.dot(vel * scale, weight.T,
                precision=jax.lax.Precision.HIGHEST) + bias
    h = jnp.maximum(h, 0.0)
    if use_tags:
        zeros = jnp.zeros((vel.shape[0], 3), dtype=h.dtype)
        return jnp.concatenate([h, zeros], axis=1)
    return h


if __name__ == "__main__":
    # Module config: InputEmbedding(input_dim=2, embedding_dim=32, scale=4.0, use_tags=True)
    input_dim = 2
    embedding_dim = 32
    scale = 4.0
    use_tags = True
    linear_dim = embedding_dim - 3 if use_tags else embedding_dim

    key = jax.random.PRNGKey(0)
    k_vel, k_w, k_b = jax.random.split(key, 3)

    # Deterministic init mirroring torch.nn.Linear default: U(-1/sqrt(in), 1/sqrt(in))
    bound = 1.0 / (input_dim ** 0.5)
    weight = jax.random.uniform(
        k_w, (linear_dim, input_dim), minval=-bound, maxval=bound, dtype=jnp.float32)
    bias = jax.random.uniform(
        k_b, (linear_dim,), minval=-bound, maxval=bound, dtype=jnp.float32)

    # One-time parameter prep (scale fold, tag padding, lane packing).
    w_tiled, b_tiled, pack = prepare_input_embedding_params(
        weight, bias, scale=scale, input_dim=input_dim,
        embedding_dim=embedding_dim, use_tags=use_tags)

    # n = 8    : single grid step (tiny batch)
    # n = 37   : grid split into 2 steps (both v7x TensorCores)
    # n = 1030 : 2 steps with a partial (masked) tail block
    for n in (8, 37, 1030):
        vel = jax.random.normal(jax.random.fold_in(k_vel, n),
                                (n, input_dim), dtype=jnp.float32)
        out = input_embedding_forward(
            vel, w_tiled, b_tiled, pack, embedding_dim=embedding_dim)
        out = jax.block_until_ready(out)
        ref = _reference(vel, weight, bias, scale=scale, use_tags=use_tags)

        assert out.shape == (n, embedding_dim)
        assert bool(jnp.all(out[:, linear_dim:] == 0.0))      # tag columns exact zero
        assert jnp.allclose(out, ref, atol=1e-4, rtol=1e-4), (
            f"mismatch at n={n}: max abs err {float(jnp.max(jnp.abs(out - ref)))}")

    # Optional bf16 output-store path (compute stays f32); looser tolerance for
    # the bf16 rounding of the stored values.
    n = 37
    vel = jax.random.normal(jax.random.fold_in(k_vel, n), (n, input_dim),
                            dtype=jnp.float32)
    out_bf16 = input_embedding_forward(
        vel, w_tiled, b_tiled, pack, embedding_dim=embedding_dim,
        out_dtype=jnp.bfloat16)
    out_bf16 = jax.block_until_ready(out_bf16)
    ref = _reference(vel, weight, bias, scale=scale, use_tags=use_tags)
    assert out_bf16.shape == (n, embedding_dim) and out_bf16.dtype == jnp.bfloat16
    assert jnp.allclose(out_bf16.astype(jnp.float32), ref, atol=1e-2, rtol=1e-2)

    print("KERNEL_OK")
</pallas_src>

<mosaic_0001>
module attributes {stable_mosaic.version = 11 : i64} {
  func.func @_mxu_kernel(%arg0: i32, %arg1: memref<8x8xf32, #tpu.memory_space<vmem>>, %arg2: memref<8x128xf32, #tpu.memory_space<vmem>>, %arg3: memref<1x128xf32, #tpu.memory_space<vmem>>, %arg4: memref<8x128xf32, #tpu.memory_space<vmem>>) attributes {dimension_semantics = [#tpu.dimension_semantics<parallel>], iteration_bounds = array<i64: 1>, scalar_prefetch = 0 : i64, scratch_operands = 0 : i64, tpu.core_type = #tpu.core_type<tc>, window_params = [{transform_indices = @transform_0, window_bounds = array<i64: 8, 8>}, {pipeline_mode = #tpu.pipeline_mode<synchronous>, transform_indices = @transform_1, window_bounds = array<i64: 8, 128>}, {pipeline_mode = #tpu.pipeline_mode<synchronous>, transform_indices = @transform_2, window_bounds = array<i64: 1, 128>}, {transform_indices = @transform_3, window_bounds = array<i64: 8, 128>}]} {
    %c0 = arith.constant 0 : index
    %c0_0 = arith.constant 0 : index
    %0 = vector.load %arg1[%c0, %c0_0] : memref<8x8xf32, #tpu.memory_space<vmem>>, vector<8x8xf32>
    %c0_1 = arith.constant 0 : index
    %c0_2 = arith.constant 0 : index
    %1 = vector.load %arg2[%c0_1, %c0_2] : memref<8x128xf32, #tpu.memory_space<vmem>>, vector<8x128xf32>
    %cst = arith.constant dense<0.000000e+00> : vector<8x128xf32>
    %2 = tpu.matmul %0, %1, %cst {dimension_numbers = #tpu.dot_dimension_numbers<[1], [0], [0], [1], [0, 0, 1, 1], [], []>, precision = #tpu.contract_precision<fp32>} : vector<8x8xf32>, vector<8x128xf32>, vector<8x128xf32> -> vector<8x128xf32>
    %c0_3 = arith.constant 0 : index
    %c0_4 = arith.constant 0 : index
    %3 = vector.load %arg3[%c0_3, %c0_4] : memref<1x128xf32, #tpu.memory_space<vmem>>, vector<1x128xf32>
    %4 = vector.broadcast %3 : vector<1x128xf32> to vector<8x128xf32>
    %5 = arith.addf %2, %4 : vector<8x128xf32>
    %cst_5 = arith.constant 0.000000e+00 : f32
    %6 = vector.broadcast %cst_5 : f32 to vector<8x128xf32>
    %7 = arith.maximumf %5, %6 : vector<8x128xf32>
    %c0_6 = arith.constant 0 : index
    %c0_7 = arith.constant 0 : index
    %8 = vector.load %arg4[%c0_6, %c0_7] : memref<8x128xf32, #tpu.memory_space<vmem>>, vector<8x128xf32>
    tpu.vector_store %arg4[%c0_6, %c0_7], %7 {strides = array<i32>} : memref<8x128xf32, #tpu.memory_space<vmem>>, vector<8x128xf32>,
    return
  }
  func.func @transform_0(%arg0: i32) -> (i32, i32) {
    %c0_i32 = arith.constant 0 : i32
    %c0_i32_0 = arith.constant 0 : i32
    return %arg0, %c0_i32 : i32, i32
  }
  func.func @transform_1(%arg0: i32) -> (i32, i32) {
    %c0_i32 = arith.constant 0 : i32
    %c0_i32_0 = arith.constant 0 : i32
    %c0_i32_1 = arith.constant 0 : i32
    return %c0_i32, %c0_i32_0 : i32, i32
  }
  func.func @transform_2(%arg0: i32) -> (i32, i32) {
    %c0_i32 = arith.constant 0 : i32
    %c0_i32_0 = arith.constant 0 : i32
    %c0_i32_1 = arith.constant 0 : i32
    return %c0_i32, %c0_i32_0 : i32, i32
  }
  func.func @transform_3(%arg0: i32) -> (i32, i32) {
    %c0_i32 = arith.constant 0 : i32
    %c0_i32_0 = arith.constant 0 : i32
    return %arg0, %c0_i32 : i32, i32
  }
}

module attributes {stable_mosaic.version = 11 : i64} {
  func.func @_vpu_kernel(%arg0: i32, %arg1: memref<8x8xf32, #tpu.memory_space<vmem>>, %arg2: memref<8x128xf32, #tpu.memory_space<vmem>>, %arg3: memref<1x128xf32, #tpu.memory_space<vmem>>, %arg4: memref<8x128xf32, #tpu.memory_space<vmem>>) attributes {dimension_semantics = [#tpu.dimension_semantics<parallel>], iteration_bounds = array<i64: 1>, scalar_prefetch = 0 : i64, scratch_operands = 0 : i64, tpu.core_type = #tpu.core_type<tc>, window_params = [{transform_indices = @transform_0, window_bounds = array<i64: 8, 8>}, {pipeline_mode = #tpu.pipeline_mode<synchronous>, transform_indices = @transform_1, window_bounds = array<i64: 8, 128>}, {pipeline_mode = #tpu.pipeline_mode<synchronous>, transform_indices = @transform_2, window_bounds = array<i64: 1, 128>}, {transform_indices = @transform_3, window_bounds = array<i64: 8, 128>}]} {
    %c0 = arith.constant 0 : index
    %c0_0 = arith.constant 0 : index
    %0 = vector.load %arg1[%c0, %c0_0] : memref<8x8xf32, #tpu.memory_space<vmem>>, vector<8x8xf32>
    %c0_1 = arith.constant 0 : index
    %c0_2 = arith.constant 0 : index
    %1 = vector.load %arg2[%c0_1, %c0_2] : memref<8x128xf32, #tpu.memory_space<vmem>>, vector<8x128xf32>
    %c0_3 = arith.constant 0 : index
    %c0_4 = arith.constant 0 : index
    %2 = vector.load %arg3[%c0_3, %c0_4] : memref<1x128xf32, #tpu.memory_space<vmem>>, vector<1x128xf32>
    %3 = vector.extract_strided_slice %0 {offsets = [0, 0], sizes = [8, 1], strides = [1, 1]} : vector<8x8xf32> to vector<8x1xf32>
    %4 = vector.extract_strided_slice %1 {offsets = [0, 0], sizes = [1, 128], strides = [1, 1]} : vector<8x128xf32> to vector<1x128xf32>
    %5 = vector.broadcast %3 : vector<8x1xf32> to vector<8x128xf32>
    %6 = vector.broadcast %4 : vector<1x128xf32> to vector<8x128xf32>
    %7 = arith.mulf %5, %6 : vector<8x128xf32>
    %8 = vector.broadcast %2 : vector<1x128xf32> to vector<8x128xf32>
    %9 = arith.addf %8, %7 : vector<8x128xf32>
    %10 = vector.extract_strided_slice %0 {offsets = [0, 1], sizes = [8, 1], strides = [1, 1]} : vector<8x8xf32> to vector<8x1xf32>
    %11 = vector.extract_strided_slice %1 {offsets = [1, 0], sizes = [1, 128], strides = [1, 1]} : vector<8x128xf32> to vector<1x128xf32>
    %12 = vector.broadcast %10 : vector<8x1xf32> to vector<8x128xf32>
    %13 = vector.broadcast %11 : vector<1x128xf32> to vector<8x128xf32>
    %14 = arith.mulf %12, %13 : vector<8x128xf32>
    %15 = arith.addf %9, %14 : vector<8x128xf32>
    %16 = vector.extract_strided_slice %0 {offsets = [0, 2], sizes = [8, 1], strides = [1, 1]} : vector<8x8xf32> to vector<8x1xf32>
    %17 = vector.extract_strided_slice %1 {offsets = [2, 0], sizes = [1, 128], strides = [1, 1]} : vector<8x128xf32> to vector<1x128xf32>
    %18 = vector.broadcast %16 : vector<8x1xf32> to vector<8x128xf32>
    %19 = vector.broadcast %17 : vector<1x128xf32> to vector<8x128xf32>
    %20 = arith.mulf %18, %19 : vector<8x128xf32>
    %21 = arith.addf %15, %20 : vector<8x128xf32>
    %22 = vector.extract_strided_slice %0 {offsets = [0, 3], sizes = [8, 1], strides = [1, 1]} : vector<8x8xf32> to vector<8x1xf32>
    %23 = vector.extract_strided_slice %1 {offsets = [3, 0], sizes = [1, 128], strides = [1, 1]} : vector<8x128xf32> to vector<1x128xf32>
    %24 = vector.broadcast %22 : vector<8x1xf32> to vector<8x128xf32>
    %25 = vector.broadcast %23 : vector<1x128xf32> to vector<8x128xf32>
    %26 = arith.mulf %24, %25 : vector<8x128xf32>
    %27 = arith.addf %21, %26 : vector<8x128xf32>
    %28 = vector.extract_strided_slice %0 {offsets = [0, 4], sizes = [8, 1], strides = [1, 1]} : vector<8x8xf32> to vector<8x1xf32>
    %29 = vector.extract_strided_slice %1 {offsets = [4, 0], sizes = [1, 128], strides = [1, 1]} : vector<8x128xf32> to vector<1x128xf32>
    %30 = vector.broadcast %28 : vector<8x1xf32> to vector<8x128xf32>
    %31 = vector.broadcast %29 : vector<1x128xf32> to vector<8x128xf32>
    %32 = arith.mulf %30, %31 : vector<8x128xf32>
    %33 = arith.addf %27, %32 : vector<8x128xf32>
    %34 = vector.extract_strided_slice %0 {offsets = [0, 5], sizes = [8, 1], strides = [1, 1]} : vector<8x8xf32> to vector<8x1xf32>
    %35 = vector.extract_strided_slice %1 {offsets = [5, 0], sizes = [1, 128], strides = [1, 1]} : vector<8x128xf32> to vector<1x128xf32>
    %36 = vector.broadcast %34 : vector<8x1xf32> to vector<8x128xf32>
    %37 = vector.broadcast %35 : vector<1x128xf32> to vector<8x128xf32>
    %38 = arith.mulf %36, %37 : vector<8x128xf32>
    %39 = arith.addf %33, %38 : vector<8x128xf32>
    %40 = vector.extract_strided_slice %0 {offsets = [0, 6], sizes = [8, 1], strides = [1, 1]} : vector<8x8xf32> to vector<8x1xf32>
    %41 = vector.extract_strided_slice %1 {offsets = [6, 0], sizes = [1, 128], strides = [1, 1]} : vector<8x128xf32> to vector<1x128xf32>
    %42 = vector.broadcast %40 : vector<8x1xf32> to vector<8x128xf32>
    %43 = vector.broadcast %41 : vector<1x128xf32> to vector<8x128xf32>
    %44 = arith.mulf %42, %43 : vector<8x128xf32>
    %45 = arith.addf %39, %44 : vector<8x128xf32>
    %46 = vector.extract_strided_slice %0 {offsets = [0, 7], sizes = [8, 1], strides = [1, 1]} : vector<8x8xf32> to vector<8x1xf32>
    %47 = vector.extract_strided_slice %1 {offsets = [7, 0], sizes = [1, 128], strides = [1, 1]} : vector<8x128xf32> to vector<1x128xf32>
    %48 = vector.broadcast %46 : vector<8x1xf32> to vector<8x128xf32>
    %49 = vector.broadcast %47 : vector<1x128xf32> to vector<8x128xf32>
    %50 = arith.mulf %48, %49 : vector<8x128xf32>
    %51 = arith.addf %45, %50 : vector<8x128xf32>
    %cst = arith.constant 0.000000e+00 : f32
    %52 = vector.broadcast %cst : f32 to vector<8x128xf32>
    %53 = arith.maximumf %51, %52 : vector<8x128xf32>
    %c0_5 = arith.constant 0 : index
    %c0_6 = arith.constant 0 : index
    %54 = vector.load %arg4[%c0_5, %c0_6] : memref<8x128xf32, #tpu.memory_space<vmem>>, vector<8x128xf32>
    tpu.vector_store %arg4[%c0_5, %c0_6], %53 {strides = array<i32>} : memref<8x128xf32, #tpu.memory_space<vmem>>, vector<8x128xf32>,
    return
  }
  func.func @transform_0(%arg0: i32) -> (i32, i32) {
    %c0_i32 = arith.constant 0 : i32
    %c0_i32_0 = arith.constant 0 : i32
    return %arg0, %c0_i32 : i32, i32
  }
  func.func @transform_1(%arg0: i32) -> (i32, i32) {
    %c0_i32 = arith.constant 0 : i32
    %c0_i32_0 = arith.constant 0 : i32
    %c0_i32_1 = arith.constant 0 : i32
    return %c0_i32, %c0_i32_0 : i32, i32
  }
  func.func @transform_2(%arg0: i32) -> (i32, i32) {
    %c0_i32 = arith.constant 0 : i32
    %c0_i32_0 = arith.constant 0 : i32
    %c0_i32_1 = arith.constant 0 : i32
    return %c0_i32, %c0_i32_0 : i32, i32
  }
  func.func @transform_3(%arg0: i32) -> (i32, i32) {
    %c0_i32 = arith.constant 0 : i32
    %c0_i32_0 = arith.constant 0 : i32
    return %arg0, %c0_i32 : i32, i32
  }
}

</mosaic_0001>

<bundles_post_ra>
// kernel: tpu_custom_call.1
= control target key start
LH: loop header
LB: loop body
LE: loop exit
PB: predicated region body
PF: predicated region fallthrough
CT: control target
= control target key end

     0   :  { %8 = vsyncpa [#allocation3], 0  ;;  %s336_s0 = inlined_call_operand.hbm [shape: f32[8,8], index: 0, kind: input, shape index: {}]   ;;  %s337_s1 = inlined_call_operand.hbm [shape: f32[8,128], index: 1, kind: input, shape index: {}]   ;;  %s338_s2 = inlined_call_operand.vmem [shape: f32[1,128], index: 2, kind: input, shape index: {}]   ;;  %s339_s3 = inlined_call_operand.hbm [shape: f32[8,128], index: 3, kind: output, shape index: {}]  }
   0x1   :  { %9 = vsyncpa [#allocation6], 0 }
   0x2   :  { %10 = vsyncpa [#allocation4], 0  ;;  %s16_s14 = sshll.u32 %s336_s0, 4  ;;  %s301_s15 = smov [#allocation2]   ;;  %s17_s14 = int_to_ptr.hbm [resolvable:$true] %s16_s14 }
   0x3   :  { %s18_s16 = sshll.u32 %s301_s15, 4  ;;  %s27_s19 = sshll.u32 %s337_s1, 4  ;;  %s19_s16 = int_to_ptr.vmem [resolvable:$true] %s18_s16  ;;  %s28_s19 = int_to_ptr.hbm [resolvable:$true] %s27_s19 }
   0x4   :  { %21 = dma.hbm_to_vmem [thread:$0]  %s17_s14, 128, %s19_s16, [#allocation3]  }
   0x5   :  { %s302_s20 = smov [#allocation5]  }
   0x6   :  { %s29_s21 = sshll.u32 %s302_s20, 4  ;;  %s30_s21 = int_to_ptr.vmem [resolvable:$true] %s29_s21 }
   0x7   :  { %32 = dma.hbm_to_vmem [thread:$0]  %s28_s19, 128, %s30_s21, [#allocation6]  }
   0x8   :  { %295 = dma.done.wait [#allocation3], 128  }
   0x9   :  { %296 = vsyncadd [#allocation3], 4294967168 }
   0xa   :  { %297 = dma.done.wait [#allocation6], 128  }
   0xb   :  { %298 = vsyncadd [#allocation6], 4294967168  ;;  %vm49_vm0 = vcmask 64512   ;;  %v44_v0 = vld [vmem:[#allocation5] sm:$0xff]  ;;  %v43_v1 = vld [vmem:[#allocation2] sm:$0xff]  ;;  %s303_s22 = smov [#allocation7]  }
   0xc   :  { %v68_v2 = vand.u32 4294901760, %v44_v0  ;;  %v51_v3 = vsel %vm49_vm0, %v43_v1, 0  ;;  %v222_v13 = vld [vmem:[%s338_s2] ss:$0 sm:$0xff]  ;;  %s206_s23 = sshll.u32 %s303_s22, 4  ;;  %s208_s26 = sshll.u32 %s339_s3, 4  ;;  %s207_s23 = int_to_ptr.vmem [resolvable:$true] %s206_s23  ;;  %s209_s26 = int_to_ptr.hbm [resolvable:$true] %s208_s26 }
   0xd   :  { %v70_v4 = vand.u32 4294901760, %v51_v3 }
   0xe   :  { %v95_v5 = vsub.f32 %v44_v0, %v68_v2  ;;  %69 = vmatpush.msra.mxu0 %v68_v2  ;;  %145 = vmatpush.msra.mxu3 %v68_v2 }
   0xf   :  { %v71_v6 = vsub.f32 %v51_v3, %v70_v4 }
  0x10   :  { %122 = vmatpush.msra.mxu2 %v95_v5  ;;  %v96_v7 = vand.u32 4294901760, %v95_v5 }
  0x11   :  { %125 = vmatmul.f32.vlgmr.msra.gmra.mxu2 %v71_v6  ;;  %v72_v8 = vand.u32 4294901760, %v71_v6 }
  0x12   :  { %171 = vmatpush.msrb.mxu0 %v96_v7  ;;  %v97_v9 = vsub.f32 %v95_v5, %v96_v7 }
  0x13   :  { %v73_v10 = vsub.f32 %v71_v6, %v72_v8  ;;  %149 = vmatmul.f32.vlgmr.msra.gmra.mxu3 %v72_v8 }
  0x14   :  { %v98_v11 = vand.u32 4294901760, %v97_v9 }
  0x15   :  { %v74_v12 = vand.u32 4294901760, %v73_v10 }
  0x16   :  { %99 = vmatpush.msra.mxu1 %v98_v11 }
  0x17   :  { %75 = vmatmul.f32.vlgmr.msra.gmra.mxu0 %v74_v12  ;;  %101 = vmatmul.f32.vlgmr.msra.gmra.mxu1 %v70_v4 }
  0x18   :  { %193 = vmatpush.msrb.mxu1 %v68_v2 }
  0x1f   :  { %173 = vmatmul.f32.vlgmr.msrb.gmra.mxu0 %v70_v4  ;;  %195 = vmatmul.f32.vlgmr.msrb.gmra.mxu1 %v70_v4 }
  0x94   :  { %v76_v14 = vpop.f32.mrf.mxu0  ;;  %v102_v15 = vpop.f32.mrf.mxu1 }
  0x95   :  { %v77_v16 = vadd.f32 %v222_v13, %v76_v14  ;;  %v126_v17 = vpop.f32.mrf.mxu2 }
  0x96   :  { %v150_v19 = vpop.f32.mrf.mxu3 }
  0x97   :  { %v103_v18 = vadd.f32 %v102_v15, %v77_v16 }
  0x99   :  { %v127_v20 = vadd.f32 %v126_v17, %v103_v18 }
  0x9b   :  { %v151_v21 = vadd.f32 %v150_v19, %v127_v20 }
  0x9c   :  { %v174_v22 = vpop.f32.mrf.mxu0  ;;  %v196_v23 = vpop.f32.mrf.mxu1 }
  0x9d   :  { %v175_v24 = vadd.f32 %v174_v22, %v151_v21 }
  0x9f   :  { %v197_v25 = vadd.f32 %v196_v23, %v175_v24 }
  0xa1   :  { %v199_v26 = vmax.f32 %v197_v25, 0.0 }
  0xa3   :  { %200 = vst [vmem:[#allocation7] sm:$0xff] %v199_v26 }
  0xa4   :  { %211 = dma.vmem_to_hbm [thread:$0]  %s207_s23, 128, %s209_s26, [#allocation4]  }
  0xa5   :  { %299 = dma.done.wait [#allocation4], 128  }
  0xa6   :  { %300 = vsyncadd [#allocation4], 4294967168 }
  0xa7   :  { %216 = vsyncpa [#allocation3], 1 }
  0xa8   :  { %217 = vsyncpa [#allocation6], 1 }
  0xa9   :  { %218 = vsyncpa [#allocation4], 1 }

// kernel: tpu_custom_call.1
= control target key start
LH: loop header
LB: loop body
LE: loop exit
PB: predicated region body
PF: predicated region fallthrough
CT: control target
= control target key end

     0   :  { %8 = vsyncpa [#allocation3], 0  ;;  %s268_s0 = inlined_call_operand.hbm [shape: f32[8,8], index: 0, kind: input, shape index: {}]   ;;  %s269_s1 = inlined_call_operand.hbm [shape: f32[8,128], index: 1, kind: input, shape index: {}]   ;;  %s270_s2 = inlined_call_operand.vmem [shape: f32[1,128], index: 2, kind: input, shape index: {}]   ;;  %s271_s3 = inlined_call_operand.hbm [shape: f32[8,128], index: 3, kind: output, shape index: {}]  }
   0x1   :  { %9 = vsyncpa [#allocation6], 0 }
   0x2   :  { %10 = vsyncpa [#allocation4], 0  ;;  %s16_s14 = sshll.u32 %s268_s0, 4  ;;  %s225_s15 = smov [#allocation2]   ;;  %s17_s14 = int_to_ptr.hbm [resolvable:$true] %s16_s14 }
   0x3   :  { %s18_s16 = sshll.u32 %s225_s15, 4  ;;  %s27_s19 = sshll.u32 %s269_s1, 4  ;;  %s19_s16 = int_to_ptr.vmem [resolvable:$true] %s18_s16  ;;  %s28_s19 = int_to_ptr.hbm [resolvable:$true] %s27_s19 }
   0x4   :  { %21 = dma.hbm_to_vmem [thread:$0]  %s17_s14, 128, %s19_s16, [#allocation3]  }
   0x5   :  { %s226_s20 = smov [#allocation5]  }
   0x6   :  { %s29_s21 = sshll.u32 %s226_s20, 4  ;;  %s30_s21 = int_to_ptr.vmem [resolvable:$true] %s29_s21 }
   0x7   :  { %32 = dma.hbm_to_vmem [thread:$0]  %s28_s19, 128, %s30_s21, [#allocation6]  }
   0x8   :  { %219 = dma.done.wait [#allocation3], 128  }
   0x9   :  { %220 = vsyncadd [#allocation3], 4294967168 }
   0xa   :  { %221 = dma.done.wait [#allocation6], 128  }
   0xb   :  { %222 = vsyncadd [#allocation6], 4294967168  ;;  %v227_v0 = vmov 0   ;;  %v228_v1 = vmov 2   ;;  %v229_v2 = vmov 4   ;;  %v43_v3 = vld [vmem:[#allocation2] sm:$0xff] }
   0xc   :  { %137 = vset.pattern.permute.xlu0 %v227_v0  ;;  %139 = vset.pattern.permute.xlu1 %v228_v1  ;;  %v230_v4 = vmov 1   ;;  %v231_v5 = vmov 3   ;;  %v232_v6 = vmov 5   ;;  %v233_v7 = vmov 6   ;;  %v44_v10 = vld [vmem:[#allocation5] sm:$0xff]  ;;  %s115_s25 = sshll.u32 %s271_s3, 4  ;;  %s116_s25 = int_to_ptr.hbm [resolvable:$true] %s115_s25 }
   0xd   :  { %141 = vset.pattern.permute.xlu2 %v229_v2  ;;  %48 = vperm.xlu0 %137, %v43_v3   ;;  %v234_v8 = vmov 7   ;;  %v51_v13 = vperm.slane %v44_v10, 0  ;;  %v146_v14 = vld [vmem:[%s270_s2] ss:$0 sm:$0xff]  ;;  %v61_v16 = vperm.slane %v44_v10, 1  ;;  %v68_v18 = vperm.slane %v44_v10, 2 }
   0xe   :  { %65 = vperm.xlu1 %139, %v43_v3   ;;  %79 = vperm.xlu2 %141, %v43_v3   ;;  %v75_v23 = vperm.slane %v44_v10, 3  ;;  %v82_v25 = vperm.slane %v44_v10, 4  ;;  %v89_v29 = vperm.slane %v44_v10, 5  ;;  %v96_v30 = vperm.slane %v44_v10, 6  ;;  %s235_s2 = smov [#allocation7]  }
   0xf   :  { %v103_v33 = vperm.slane %v44_v10, 7  ;;  %s113_s22 = sshll.u32 %s235_s2, 4  ;;  %s114_s22 = int_to_ptr.vmem [resolvable:$true] %s113_s22 }
  0x15   :  { %138 = vset.pattern.permute.xlu0 %v230_v4 }
  0x16   :  { %140 = vset.pattern.permute.xlu1 %v231_v5  ;;  %58 = vperm.xlu0 %138, %v43_v3  }
  0x17   :  { %72 = vperm.xlu1 %140, %v43_v3   ;;  %142 = vset.pattern.permute.xlu2 %v232_v6 }
  0x18   :  { %86 = vperm.xlu2 %142, %v43_v3  }
  0x1e   :  { %145 = vset.pattern.permute.xlu0 %v234_v8 }
  0x1f   :  { %143 = vset.pattern.permute.xlu1 %v233_v7 }
  0x20   :  { %93 = vperm.xlu1 %143, %v43_v3   ;;  %144 = vset.pattern.permute.xlu2 %v234_v8 }
  0x21   :  { %100 = vperm.xlu2 %144, %v43_v3  }
  0x68   :  { %v80_v9 = vpop.permute.xlu2 %79 }
  0x69   :  { %v83_v31 = vmul.f32 %v82_v25, %v80_v9 }
  0x72   :  { %v87_v17 = vpop.permute.xlu2 %86 }
  0x73   :  { %v90_v36 = vmul.f32 %v89_v29, %v87_v17 }
  0x7b   :  { %v101_v34 = vpop.permute.xlu2 %100 }
  0x7c   :  { %v104_v40 = vmul.f32 %v103_v33, %v101_v34 }
  0x7f   :  { %v49_v11 = vpop.permute.xlu0 %48 }
  0x80   :  { %v66_v12 = vpop.permute.xlu1 %65  ;;  %v52_v15 = vmul.f32 %v51_v13, %v49_v11 }
  0x81   :  { %v69_v24 = vmul.f32 %v68_v18, %v66_v12 }
  0x82   :  { %v56_v21 = vadd.f32 %v146_v14, %v52_v15 }
  0x88   :  { %v59_v19 = vpop.permute.xlu0 %58 }
  0x89   :  { %v73_v20 = vpop.permute.xlu1 %72  ;;  %v62_v22 = vmul.f32 %v61_v16, %v59_v19 }
  0x8a   :  { %v76_v28 = vmul.f32 %v75_v23, %v73_v20 }
  0x8b   :  { %v63_v26 = vadd.f32 %v62_v22, %v56_v21 }
  0x8d   :  { %v70_v27 = vadd.f32 %v69_v24, %v63_v26 }
  0x8f   :  { %v77_v32 = vadd.f32 %v76_v28, %v70_v27 }
  0x91   :  { %v84_v35 = vadd.f32 %v83_v31, %v77_v32 }
  0x92   :  { %v94_v37 = vpop.permute.xlu1 %93 }
  0x93   :  { %v97_v38 = vmul.f32 %v96_v30, %v94_v37  ;;  %v91_v39 = vadd.f32 %v90_v36, %v84_v35 }
  0x95   :  { %v98_v41 = vadd.f32 %v97_v38, %v91_v39 }
  0x97   :  { %v105_v42 = vadd.f32 %v104_v40, %v98_v41 }
  0x99   :  { %v106_v43 = vmax.f32 %v105_v42, 0.0 }
  0x9b   :  { %107 = vst [vmem:[#allocation7] sm:$0xff] %v106_v43 }
  0x9c   :  { %118 = dma.vmem_to_hbm [thread:$0]  %s114_s22, 128, %s116_s25, [#allocation4]  }
  0x9d   :  { %223 = dma.done.wait [#allocation4], 128  }
  0x9e   :  { %224 = vsyncadd [#allocation4], 4294967168 }
  0x9f   :  { %123 = vsyncpa [#allocation3], 1 }
  0xa0   :  { %124 = vsyncpa [#allocation6], 1 }
  0xa1   :  { %125 = vsyncpa [#allocation4], 1 }

</bundles_post_ra>
